<compile_context>
chip_gen: v5e
topology: v5e:2x2
jax: 0.10.0
libtpu: 0.0.40
codegen_flags: <defaults>
</compile_context>

<pallas_src>
import functools

import jax
import jax.numpy as jnp
from jax import lax
from jax.experimental import pallas as pl
from jax.experimental.pallas import tpu as pltpu


def _round_up(x, m):
    return ((x + m - 1) // m) * m


def _vmem_limit_bytes():
    """Per-generation scoped-VMEM limit: ~75% of physical, capped at 100 MiB."""
    cap = 64 * 1024 * 1024  # v7x per-TensorCore VMEM = tightest modern generation
    try:
        info = pltpu.get_tpu_info()
        cap = int(getattr(info, "vmem_capacity_bytes", cap) or cap)
    except Exception:
        pass
    return min((cap * 3) // 4, 100 * 1024 * 1024)


def _pick_col_tile(b):
    """Largest MXU-friendly column tile whose extra row padding stays <= ~25%."""
    b16 = _round_up(b, 16)  # bf16 sublane granularity
    for c in (256, 128, 64, 32, 16):
        if c <= b16 and _round_up(b, c) - b16 <= b16 // 4:
            return c
    return 16


def _pick_row_tile(b_pad, tn, d_pad, itemsize, budget_bytes):
    """Largest row tile dividing b_pad whose double-buffered blocks fit VMEM."""
    cands = sorted({min(b_pad, 1024), 1024, 512, 256, 128, 64, 32, 16},
                   reverse=True)
    for tm in cands:
        if tm <= b_pad and b_pad % tm == 0:
            if 2 * (tm + tn) * d_pad * itemsize <= budget_bytes:
                return tm
    return 16


def _pick_norm_tile(b_pad, d, d_pad, in_itemsize, out_itemsize, budget_bytes):
    """Row tile for the (mem-bound) normalize pre-pass."""
    for c in (256, 128, 64, 32, 16):
        if c <= b_pad and b_pad % c == 0:
            if 2 * c * (d * in_itemsize + d_pad * out_itemsize) <= budget_bytes:
                return c
    return 16


# ---------------------------------------------------------------------------
# Kernel 1: fused pad + L2-normalize + sqrt(1/T) scale + cast.
# ---------------------------------------------------------------------------
def _normalize_kernel(xi_ref, xj_ref, z_ref, *, valid_cols, scale):
    """Produce one (tmn, d_pad) tile of z from the matching tile of emb_i/emb_j.

    Grid: (half, row_tile_within_half).  The unused half's input block index is
    pinned at 0 by its index_map; pl.when picks which input feeds this tile.
    """
    h = pl.program_id(0)

    def _run(x_ref):
        x = x_ref[...].astype(jnp.float32)
        ssq = jnp.sum(x * x, axis=1, keepdims=True)
        # rsqrt(max(ssq, eps^2)) == 1 / max(||x||, eps)  (F.normalize, eps=1e-12);
        # sqrt(1/T) folded into z so kernel 2 never multiplies sim by 1/T.
        inv = lax.rsqrt(jnp.maximum(ssq, jnp.float32(1e-24))) * jnp.float32(scale)
        z = (x * inv).astype(z_ref.dtype)
        if valid_cols == z_ref.shape[1]:
            z_ref[...] = z
        else:
            # Zero the feature padding (it feeds the MXU contraction), then store.
            z_ref[...] = jnp.zeros(z_ref.shape, z_ref.dtype)
            z_ref[:, :valid_cols] = z

    @pl.when(h == 0)
    def _():
        _run(xi_ref)

    @pl.when(h != 0)
    def _():
        _run(xj_ref)


# ---------------------------------------------------------------------------
# Kernel 2: streamed masked similarity reductions -> per-row loss terms.
# ---------------------------------------------------------------------------
def _loss_terms_kernel(zrow_ref, zcol_ref, out_ref, pos_acc, neg_acc, *,
                       b, b_pad, tile_m, tile_n):
    """One (TM, TN) tile of z @ z^T folded into per-row positive/negative sums.

    Grid: (row tiles [parallel], col tiles [arbitrary, reduction]).  TM and TN
    divide b_pad, so each tile lies entirely on one side of the half boundary:
    same-half tiles only do the masked positive sum, cross-half tiles only do
    the exp()/negative sum (no dead EUP / select work).
    """
    i = pl.program_id(0)
    j = pl.program_id(1)

    @pl.when(j == 0)
    def _():
        pos_acc[...] = jnp.zeros_like(pos_acc)
        neg_acc[...] = jnp.zeros_like(neg_acc)

    # (TM, D) x (TN, D) contracted on dim 1 -> (TM, TN): bf16 MXU, f32 accumulate.
    # TODO(synk): confirm in the Mosaic bundle dump that this NT-form dot does
    # not emit a per-tile XLU transpose of the column tile; if it does, stream a
    # one-off transposed (D, N) copy of z for the column operand instead.
    sim = lax.dot_general(
        zrow_ref[...], zcol_ref[...],
        dimension_numbers=(((1,), (1,)), ((), ())),
        preferred_element_type=jnp.float32)

    row_start = i * tile_m
    col_start = j * tile_n
    row_half_start = (row_start // b_pad) * b_pad      # scalar: 0 or b_pad
    col_half_start = (col_start // b_pad) * b_pad
    same_half = row_half_start == col_half_start

    col_idx = col_start + lax.broadcasted_iota(jnp.int32, (1, tile_n), 1)
    col_valid = col_idx < col_half_start + b           # mask padded columns

    @pl.when(same_half)
    def _():
        row_idx = row_start + lax.broadcasted_iota(jnp.int32, (tile_m, 1), 0)
        pos_mask = (row_idx != col_idx) & col_valid
        pos_acc[...] += jnp.sum(jnp.where(pos_mask, sim, 0.0),
                                axis=1, keepdims=True)

    @pl.when(jnp.logical_not(same_half))
    def _():
        neg = jnp.where(col_valid, jnp.exp(sim), 0.0)  # sim already carries 1/T
        neg_acc[...] += jnp.sum(neg, axis=1, keepdims=True)

    @pl.when(j == pl.num_programs(1) - 1)
    def _():
        nominator = jnp.exp(pos_acc[...] * jnp.float32(1.0 / (b - 1)))
        term = nominator / (nominator + neg_acc[...])
        row_idx = row_start + lax.broadcasted_iota(jnp.int32, (tile_m, 1), 0)
        row_valid = row_idx < row_half_start + b       # zero the padded rows
        out_ref[...] = jnp.where(row_valid, term, 0.0)


# ---------------------------------------------------------------------------
# Wrapper.
# ---------------------------------------------------------------------------
def group_contrastive_loss(emb_i, emb_j, temperature=0.5,
                           compute_dtype=jnp.bfloat16):
    assert emb_i.ndim == 2 and emb_i.shape == emb_j.shape
    b, d = emb_i.shape
    assert b >= 2, "GroupContrastiveLoss needs batch_size >= 2 (divides by B-1)"
    n = 2 * b

    scale = float(1.0 / float(temperature)) ** 0.5     # fold 1/T into z
    d_pad = _round_up(d, 128)
    tn = _pick_col_tile(b)
    b_pad = _round_up(b, tn)
    n_pad = 2 * b_pad

    z_itemsize = jnp.dtype(compute_dtype).itemsize
    in_itemsize = jnp.dtype(emb_i.dtype).itemsize
    vmem_limit = _vmem_limit_bytes()
    tm = _pick_row_tile(b_pad, tn, d_pad, z_itemsize, vmem_limit // 2)

    # Row-pad each half up front only when the batch is not tile-aligned; this
    # keeps kernel 1's BlockSpecs exact (no out-of-range blocks) and is a tiny
    # copy compared with the old full (n_pad, d_pad) slab glue.
    if b_pad != b:
        pad = ((0, b_pad - b), (0, 0))
        emb_i = jnp.pad(emb_i, pad)
        emb_j = jnp.pad(emb_j, pad)

    # ---- Kernel 1: fused pad + normalize + scale + cast (one read of each emb,
    #      one compute_dtype write of z; no wrapper slab pass). ----------------
    tmn = _pick_norm_tile(b_pad, d, d_pad, in_itemsize, z_itemsize,
                          min(vmem_limit // 4, 8 * 1024 * 1024))
    nb = b_pad // tmn
    norm_kernel = functools.partial(_normalize_kernel, valid_cols=d, scale=scale)
    z = pl.pallas_call(
        norm_kernel,
        out_shape=jax.ShapeDtypeStruct((n_pad, d_pad), compute_dtype),
        grid_spec=pltpu.PrefetchScalarGridSpec(
            num_scalar_prefetch=0,
            grid=(2, nb),
            in_specs=[
                pl.BlockSpec((tmn, d), lambda h, t: (t * (1 - h), 0)),  # emb_i
                pl.BlockSpec((tmn, d), lambda h, t: (t * h, 0)),        # emb_j
            ],
            out_specs=pl.BlockSpec((tmn, d_pad), lambda h, t: (h * nb + t, 0)),
        ),
        compiler_params=pltpu.CompilerParams(
            dimension_semantics=("parallel", "arbitrary"),
            vmem_limit_bytes=vmem_limit),
    )(emb_i, emb_j)

    # ---- Kernel 2: streamed masked similarity -> per-row loss terms. ---------
    kernel = functools.partial(
        _loss_terms_kernel, b=b, b_pad=b_pad, tile_m=tm, tile_n=tn)
    grid = (n_pad // tm, n_pad // tn)
    cost = pl.CostEstimate(
        flops=2 * n_pad * n_pad * d_pad,
        transcendentals=n_pad * b_pad + n_pad,
        bytes_accessed=(grid[0] + 1) * n_pad * d_pad * z_itemsize + n_pad * 4)

    terms = pl.pallas_call(
        kernel,
        out_shape=jax.ShapeDtypeStruct((n_pad, 1), jnp.float32),
        grid_spec=pltpu.PrefetchScalarGridSpec(
            num_scalar_prefetch=0,
            grid=grid,
            in_specs=[
                pl.BlockSpec((tm, d_pad), lambda i, j: (i, 0)),   # row tile of z
                pl.BlockSpec((tn, d_pad), lambda i, j: (j, 0)),   # col tile of z
            ],
            out_specs=pl.BlockSpec((tm, 1), lambda i, j: (i, 0)),
            scratch_shapes=[
                pltpu.VMEM((tm, 1), jnp.float32),   # running positive sum
                pltpu.VMEM((tm, 1), jnp.float32),   # running exp-negative sum
            ],
        ),
        compiler_params=pltpu.CompilerParams(
            dimension_semantics=("parallel", "arbitrary"),
            vmem_limit_bytes=vmem_limit),
        cost_estimate=cost,
    )(z, z)

    # TODO(synk): the (n_pad, 1) per-row output lowers to masked stores; a
    # lane-dense (n_pad // tm, tm) layout would avoid them, but the output is tiny.
    loss_partial = jnp.sum(terms) / jnp.float32(n)
    return -jnp.log(loss_partial)


def _reference_loss(emb_i, emb_j, temperature=0.5):
    # Pure-JAX reference mirroring the PyTorch forward exactly.
    b = emb_i.shape[0]
    z_i = emb_i / jnp.maximum(jnp.linalg.norm(emb_i, axis=1, keepdims=True), 1e-12)
    z_j = emb_j / jnp.maximum(jnp.linalg.norm(emb_j, axis=1, keepdims=True), 1e-12)
    reps = jnp.concatenate([z_i, z_j], axis=0)
    sim = reps @ reps.T
    pos_mask = 1.0 - jnp.eye(b, dtype=jnp.float32)
    sim_ij = jnp.sum(sim[:b, :b] * pos_mask, axis=1) / (b - 1)
    sim_ji = jnp.sum(sim[b:, b:] * pos_mask, axis=1) / (b - 1)
    positives = jnp.concatenate([sim_ij, sim_ji], axis=0)
    neg_mask = (1.0 - jnp.eye(2 * b, dtype=jnp.float32))
    neg_mask = neg_mask.at[:b, :b].set(0.0).at[b:, b:].set(0.0)
    nominator = jnp.exp(positives / temperature)
    denominator = jnp.sum(neg_mask * jnp.exp(sim / temperature), axis=1)
    loss_partial = jnp.sum(nominator / (nominator + denominator)) / (2 * b)
    return -jnp.log(loss_partial)


if __name__ == "__main__":
    batch_size = 4
    hidden = 32
    key = jax.random.PRNGKey(0)
    k1, k2 = jax.random.split(key)
    emb_i = jax.random.normal(k1, (batch_size, hidden), dtype=jnp.float32)
    emb_j = jax.random.normal(k2, (batch_size, hidden), dtype=jnp.float32)

    ref = _reference_loss(emb_i, emb_j, temperature=0.5)

    # f32 streaming path: tight check against the pure-JAX reference.
    loss_f32 = group_contrastive_loss(emb_i, emb_j, temperature=0.5,
                                      compute_dtype=jnp.float32)
    jax.block_until_ready(loss_f32)
    assert jnp.allclose(loss_f32, ref, atol=1e-4, rtol=1e-4), (loss_f32, ref)

    # Default bf16 streaming path (bf16 z, f32 MXU accumulation): loose tolerance.
    loss_bf16 = group_contrastive_loss(emb_i, emb_j, temperature=0.5)
    jax.block_until_ready(loss_bf16)
    assert jnp.allclose(loss_bf16, ref, atol=3e-2, rtol=3e-2), (loss_bf16, ref)

    print("KERNEL_OK")
</pallas_src>

<mosaic_0001>
module attributes {stable_mosaic.version = 11 : i64} {
  func.func @_normalize_kernel(%arg0: i32, %arg1: i32, %arg2: memref<16x32xf32, #tpu.memory_space<vmem>>, %arg3: memref<16x32xf32, #tpu.memory_space<vmem>>, %arg4: memref<16x128xf32, #tpu.memory_space<vmem>>) attributes {dimension_semantics = [#tpu.dimension_semantics<parallel>, #tpu.dimension_semantics<arbitrary>], iteration_bounds = array<i64: 2, 1>, scalar_prefetch = 0 : i64, scratch_operands = 0 : i64, tpu.core_type = #tpu.core_type<tc>, window_params = [{transform_indices = @transform_0, window_bounds = array<i64: 16, 32>}, {transform_indices = @transform_1, window_bounds = array<i64: 16, 32>}, {transform_indices = @transform_2, window_bounds = array<i64: 16, 128>}]} {
    %c0_i32 = arith.constant 0 : i32
    %0 = arith.cmpi eq, %arg0, %c0_i32 : i32
    %1 = arith.extui %0 : i1 to i32
    %c0_i32_0 = arith.constant 0 : i32
    %2 = arith.cmpi ne, %1, %c0_i32_0 : i32
    scf.if %2 {
      %c0 = arith.constant 0 : index
      %c0_3 = arith.constant 0 : index
      %6 = vector.load %arg2[%c0, %c0_3] : memref<16x32xf32, #tpu.memory_space<vmem>>, vector<16x32xf32>
      %7 = arith.mulf %6, %6 : vector<16x32xf32>
      %cst = arith.constant dense<0.000000e+00> : vector<16xf32>
      %8 = vector.multi_reduction <add>, %7, %cst [1] : vector<16x32xf32> to vector<16xf32>
      %9 = vector.shape_cast %8 : vector<16xf32> to vector<16x1xf32>
      %cst_4 = arith.constant 1.000000e-24 : f32
      %10 = vector.broadcast %cst_4 : f32 to vector<16x1xf32>
      %11 = arith.maximumf %9, %10 : vector<16x1xf32>
      %12 = math.rsqrt %11 : vector<16x1xf32>
      %cst_5 = arith.constant 1.41421354 : f32
      %13 = vector.broadcast %cst_5 : f32 to vector<16x1xf32>
      %14 = arith.mulf %12, %13 : vector<16x1xf32>
      %15 = vector.broadcast %14 : vector<16x1xf32> to vector<16x32xf32>
      %16 = arith.mulf %6, %15 : vector<16x32xf32>
      %cst_6 = arith.constant 0.000000e+00 : f32
      %17 = vector.broadcast %cst_6 : f32 to vector<16x128xf32>
      %c0_7 = arith.constant 0 : index
      %c0_8 = arith.constant 0 : index
      %18 = vector.load %arg4[%c0_7, %c0_8] : memref<16x128xf32, #tpu.memory_space<vmem>>, vector<16x128xf32>
      tpu.vector_store %arg4[%c0_7, %c0_8], %17 {strides = array<i32>} : memref<16x128xf32, #tpu.memory_space<vmem>>, vector<16x128xf32>,
      %c0_9 = arith.constant 0 : index
      %c0_10 = arith.constant 0 : index
      %19 = vector.load %arg4[%c0_9, %c0_10] : memref<16x128xf32, #tpu.memory_space<vmem>>, vector<16x32xf32>
      tpu.vector_store %arg4[%c0_9, %c0_10], %16 {strides = array<i32>} : memref<16x128xf32, #tpu.memory_space<vmem>>, vector<16x32xf32>,
    } else {
    }
    %c0_i32_1 = arith.constant 0 : i32
    %3 = arith.cmpi ne, %arg0, %c0_i32_1 : i32
    %4 = arith.extui %3 : i1 to i32
    %c0_i32_2 = arith.constant 0 : i32
    %5 = arith.cmpi ne, %4, %c0_i32_2 : i32
    scf.if %5 {
      %c0 = arith.constant 0 : index
      %c0_3 = arith.constant 0 : index
      %6 = vector.load %arg3[%c0, %c0_3] : memref<16x32xf32, #tpu.memory_space<vmem>>, vector<16x32xf32>
      %7 = arith.mulf %6, %6 : vector<16x32xf32>
      %cst = arith.constant dense<0.000000e+00> : vector<16xf32>
      %8 = vector.multi_reduction <add>, %7, %cst [1] : vector<16x32xf32> to vector<16xf32>
      %9 = vector.shape_cast %8 : vector<16xf32> to vector<16x1xf32>
      %cst_4 = arith.constant 1.000000e-24 : f32
      %10 = vector.broadcast %cst_4 : f32 to vector<16x1xf32>
      %11 = arith.maximumf %9, %10 : vector<16x1xf32>
      %12 = math.rsqrt %11 : vector<16x1xf32>
      %cst_5 = arith.constant 1.41421354 : f32
      %13 = vector.broadcast %cst_5 : f32 to vector<16x1xf32>
      %14 = arith.mulf %12, %13 : vector<16x1xf32>
      %15 = vector.broadcast %14 : vector<16x1xf32> to vector<16x32xf32>
      %16 = arith.mulf %6, %15 : vector<16x32xf32>
      %cst_6 = arith.constant 0.000000e+00 : f32
      %17 = vector.broadcast %cst_6 : f32 to vector<16x128xf32>
      %c0_7 = arith.constant 0 : index
      %c0_8 = arith.constant 0 : index
      %18 = vector.load %arg4[%c0_7, %c0_8] : memref<16x128xf32, #tpu.memory_space<vmem>>, vector<16x128xf32>
      tpu.vector_store %arg4[%c0_7, %c0_8], %17 {strides = array<i32>} : memref<16x128xf32, #tpu.memory_space<vmem>>, vector<16x128xf32>,
      %c0_9 = arith.constant 0 : index
      %c0_10 = arith.constant 0 : index
      %19 = vector.load %arg4[%c0_9, %c0_10] : memref<16x128xf32, #tpu.memory_space<vmem>>, vector<16x32xf32>
      tpu.vector_store %arg4[%c0_9, %c0_10], %16 {strides = array<i32>} : memref<16x128xf32, #tpu.memory_space<vmem>>, vector<16x32xf32>,
    } else {
    }
    return
  }
  func.func @transform_0(%arg0: i32, %arg1: i32) -> (i32, i32) {
    %c1_i32 = arith.constant 1 : i32
    %0 = arith.subi %c1_i32, %arg0 : i32
    %1 = arith.muli %arg1, %0 : i32
    %c0_i32 = arith.constant 0 : i32
    %c0_i32_0 = arith.constant 0 : i32
    return %1, %c0_i32 : i32, i32
  }
  func.func @transform_1(%arg0: i32, %arg1: i32) -> (i32, i32) {
    %0 = arith.muli %arg1, %arg0 : i32
    %c0_i32 = arith.constant 0 : i32
    %c0_i32_0 = arith.constant 0 : i32
    return %0, %c0_i32 : i32, i32
  }
  func.func @transform_2(%arg0: i32, %arg1: i32) -> (i32, i32) {
    %c1_i32 = arith.constant 1 : i32
    %0 = arith.muli %arg0, %c1_i32 : i32
    %1 = arith.addi %0, %arg1 : i32
    %c0_i32 = arith.constant 0 : i32
    %c0_i32_0 = arith.constant 0 : i32
    return %1, %c0_i32 : i32, i32
  }
}

</mosaic_0001>

<bundles_post_ra>
// kernel: tpu_custom_call.1
= control target key start
LH: loop header
LB: loop body
LE: loop exit
PB: predicated region body
PF: predicated region fallthrough
CT: control target
= control target key end

     0   :  { %7 = vsyncpa [#allocation3], 0  ;;  %s859_s0 = inlined_call_operand.hbm [shape: f32[16,32], index: 0, kind: input, shape index: {}]   ;;  %s860_s1 = inlined_call_operand.hbm [shape: f32[16,32], index: 1, kind: input, shape index: {}]   ;;  %s861_s2 = inlined_call_operand.hbm [shape: f32[32,128], index: 2, kind: output, shape index: {}]  }
   0x1   :  { %9 = vsyncpa [#allocation3 + $0x1], 0 }
   0x2   :  { %10 = vsyncpa [#allocation6], 0 }
   0x3   :  { %12 = vsyncpa [#allocation6 + $0x1], 0 }
   0x4   :  { %13 = vsyncpa [#allocation4], 0 }
   0x5   :  { %15 = vsyncpa [#allocation4 + $0x1], 0  ;;  %s728_s9 = smov 0   ;;  %s730_s10 = smov 0  }
   0x6   :  { %s732_s11 = smov 0   ;;  %s734_s12 = smov 0  }
   0x7   :  { %s736_s13 = smov 0   ;;  %s738_s14 = smov 0  }
   0x8 LB: > { %s448_s15 = sadd.s32 4294967295, %s703_s14   ;;  %s449_s16 = sadd.s32 4294967294, %s703_s14   ;;  %s703_s14 = sphi %s738_s14, %s21_s14   ;;  %s699_s13 = sphi %s736_s13, %s868_s13   ;;  %s695_s12 = sphi %s734_s12, %s867_s12   ;;  %s691_s11 = sphi %s732_s11, %s866_s11   ;;  %s687_s10 = sphi %s730_s10, %s865_s10   ;;  %s683_s9 = sphi %s728_s9, %s864_s9  }
   0x9   : > { %s33_s17 = sadd.s32 1, %s699_s13  ;;  %s100_s18 = sadd.s32 1, %s691_s11 }
   0xa   : > { %p35_p0 = scmp.ge.s32.totalorder %s33_s17, 2  ;;  %p110_p1 = scmp.ne.s32.totalorder %s691_s11, %s687_s10 }
   0xb   : > { %p111_p2 = scmp.eq.s32.totalorder %s448_s15, 1  ;;  %p116_p3 = scmp.ne.s32.totalorder %s687_s10, %s683_s9 }
   0xc   : > { %s870_s17 = smov (%p35_p0, %s33_s17), 0  ;;  %p117_p5 = scmp.eq.s32.totalorder %s449_s16, 1 }
   0xd   : > { %p770_p4 = por %p111_p2, %p110_p1  ;;  %s97_s20 = ssub.s32 %s699_s13, %s870_s17 }
   0xe   : > { %p451_p6 = scmp.ge.s32.totalorder %s703_s14, 2  ;;  %p98_p7 = scmp.eq.s32.totalorder %s97_s20, 0 }
   0xf   : > { %p777_p8 = por %p117_p5, %p116_p3  ;;  %p487_p9 = scmp.lt.s32.totalorder %s703_s14, 2 }
  0x10   : > { %s783_s22 = scalar_select %p98_p7, %s691_s11, %s100_s18  }
  0x11   : > { %p488_p10 = scmp.eq.s32.totalorder %s703_s14, 0  ;;  %s149_s25 = sshll.u32 %s859_s0, 4  ;;  %s150_s25 = int_to_ptr.hbm [resolvable:$true] %s149_s25 }
  0x12   : > { %s705_s26 = smov [#allocation2]   ;;  %s706_s28 = smov 128  }
  0x13   : > { %s151_s27 = sshll.u32 %s705_s26, 4  ;;  %p477_p11 = pnand %p488_p10, %p487_p9  ;;  %s152_s27 = int_to_ptr.vmem [resolvable:$true] %s151_s27 }
  0x14   : > { %s707_s29 = smov 8   ;;  %p454_p12 = scmp.ge.s32.totalorder %s703_s14, 1 }
  0x15   : > { %479 = dma.hbm_to_vmem [thread:$0]  (!%p477_p11), %s150_s25, 256, %s152_s27, [#allocation3], %s706_s28, %s706_s28, %s707_s29  }
  0x16   : > { %p182_p13 = scmp.lt.s32.totalorder %s703_s14, 3  ;;  %s172_s4 = sshll.u32 %s860_s1, 4  ;;  %s173_s4 = int_to_ptr.hbm [resolvable:$true] %s172_s4 }
  0x17   : > { %s708_s5 = smov [#allocation5]  }
  0x18   : > { %p183_p0 = pnand %p454_p12, %p182_p13  ;;  %s174_s6 = sshll.u32 %s708_s5, 4  ;;  %s175_s6 = int_to_ptr.vmem [resolvable:$true] %s174_s6 }
  0x19   : > { %482 = dma.hbm_to_vmem [thread:$0]  (!%p477_p11), %s173_s4, 256, %s175_s6, [#allocation6], %s706_s28, %s706_s28, %s707_s29  }
  0x1a   : > { %186 = sbr.rel (%p183_p0) target bundleno = 370 (0x172), region = 28  ;;  %p490_p1 = scmp.eq.s32.totalorder (!%p183_p0), %s448_s15, 0 }
  0x1f   : > { %670 = dma.done.wait (%p490_p1), [#allocation3], 256  }
  0x20   : > { %672 = vsyncadd (%p490_p1), [#allocation3], 4294967040 }
  0x21   : > { %674 = dma.done.wait (%p490_p1), [#allocation6], 256  }
  0x22   : > { %676 = vsyncadd (%p490_p1), [#allocation6], 4294967040  ;;  %s226_s7 = sand.u32 1, %s687_s10   ;;  %p458_p2 = scmp.ne.s32.totalorder %s695_s12, 0 }
  0x23   : > { %s457_s8 = sshll.u32 %s226_s7, 4 }
  0x24   : > { %s799_s16 = scalar_lea.vmem [#allocation7], %s457_s8  ;;  %239 = sbr.rel (%p458_p2) target bundleno = 194 (0xc2), region = 40 }
  0x29   : > { %v240_v0 = vld [vmem:[#allocation2] sm:$0xff]  ;;  %vm244_vm0 = vcmask 261120   ;;  %v709_v2 = vmov 0.0   ;;  %v241_v3 = vld [vmem:[#allocation2 + $0x8] sm:$0xff] }
  0x2a   : > { %v242_v1 = vmul.f32 %v240_v0, %v240_v0  ;;  %277 = vst [vmem:[%s799_s16] sm:$0xff] %v709_v2  ;;  %v243_v5 = vmul.f32 %v241_v3, %v241_v3 }
  0x2b   : > { %278 = vst [vmem:[%s799_s16 + $0x8] sm:$0xff] %v709_v2 }
  0x2c   : > { %v245_v4 = vsel %vm244_vm0, %v242_v1, 0.0  ;;  %v248_v6 = vsel %vm244_vm0, %v243_v5, 0.0 }
  0x2d   : > { %246 = vadd.xlane.f32.xlu0 %v245_v4 }
  0x35   : > { %249 = vadd.xlane.f32.xlu0 %v248_v6 }
  0xa0   : > { %v247_v7 = vpop.xlane.xlu0 %246 }
  0xa1   : > { %v251_v8 = vmax.f32 %v247_v7, 1e-24 }
  0xa3   : > { %549 = vrsqrt.f32 %v251_v8  ;;  %vm259_vm2 = vweird.f32 %v251_v8 }
  0xa8   : > { %v250_v9 = vpop.xlane.xlu0 %249 }
  0xa9   : > { %v550_v10 = vpop.eup %549  ;;  %v252_v11 = vmax.f32 %v250_v9, 1e-24 }
  0xaa   : > { %v254_v12 = vmul.f32 %v550_v10, %v251_v8  ;;  %vm260_vm1 = vweird.f32 %v550_v10 }
  0xab   : > { %551 = vrsqrt.f32 %v252_v11  ;;  %vm261_vm3 = vmor %vm259_vm2, %vm260_vm1  ;;  %vm269_vm5 = vweird.f32 %v252_v11 }
  0xac   : > { %v255_v13 = vmul.f32 %v550_v10, %v254_v12 }
  0xae   : > { %v256_v14 = vmul.f32 0.5, %v255_v13 }
  0xb0   : > { %v257_v15 = vsub.f32 1.5, %v256_v14 }
  0xb1   : > { %v552_v16 = vpop.eup %551 }
  0xb2   : > { %v258_v17 = vmul.f32 %v550_v10, %v257_v15  ;;  %v264_v18 = vmul.f32 %v552_v16, %v252_v11  ;;  %vm270_vm4 = vweird.f32 %v552_v16 }
  0xb3   : > { %vm271_vm6 = vmor %vm269_vm5, %vm270_vm4 }
  0xb4   : > { %v262_v19 = vsel %vm261_vm3, %v550_v10, %v258_v17  ;;  %v265_v20 = vmul.f32 %v552_v16, %v264_v18 }
  0xb5   : > { %v273_v21 = vmul.f32 1.4142135, %v262_v19 }
  0xb6   : > { %v266_v22 = vmul.f32 0.5, %v265_v20 }
  0xb7   : > { %v275_v23 = vmul.f32 %v273_v21, %v240_v0 }
  0xb8   : > { %v267_v24 = vsub.f32 1.5, %v266_v22 }
  0xb9   : > { %279 = vst.msk [vmem:[%s799_s16] sm:$0xff] %vm244_vm0, %v275_v23 }
  0xba   : > { %v268_v25 = vmul.f32 %v552_v16, %v267_v24 }
  0xbc   : > { %v272_v26 = vsel %vm271_vm6, %v552_v16, %v268_v25 }
  0xbd   : > { %v274_v27 = vmul.f32 1.4142135, %v272_v26 }
  0xbf   : > { %v276_v28 = vmul.f32 %v274_v27, %v241_v3 }
  0xc1   : > { %280 = vst.msk [vmem:[%s799_s16 + $0x8] sm:$0xff] %vm244_vm0, %v276_v28 }
  0xc2 PF: > { %p459_p3 = scmp.eq.s32.totalorder %s695_s12, 0 }
  0xc4   : > { %284 = sbr.rel (%p459_p3) target bundleno = 354 (0x162), region = 44 }
  0xc9   : > { %v285_v29 = vld [vmem:[#allocation5] sm:$0xff]  ;;  %vm289_vm7 = vcmask 261120   ;;  %v710_v31 = vmov 0.0   ;;  %v286_v32 = vld [vmem:[#allocation5 + $0x8] sm:$0xff] }
  0xca   : > { %v287_v30 = vmul.f32 %v285_v29, %v285_v29  ;;  %322 = vst [vmem:[%s799_s16] sm:$0xff] %v710_v31  ;;  %v288_v34 = vmul.f32 %v286_v32, %v286_v32 }
  0xcb   : > { %323 = vst [vmem:[%s799_s16 + $0x8] sm:$0xff] %v710_v31 }
  0xcc   : > { %v290_v33 = vsel %vm289_vm7, %v287_v30, 0.0  ;;  %v293_v35 = vsel %vm289_vm7, %v288_v34, 0.0 }
  0xcd   : > { %291 = vadd.xlane.f32.xlu0 %v290_v33 }
  0xd5   : > { %294 = vadd.xlane.f32.xlu0 %v293_v35 }
 0x140   : > { %v292_v36 = vpop.xlane.xlu0 %291 }
 0x141   : > { %v296_v37 = vmax.f32 %v292_v36, 1e-24 }
 0x143   : > { %553 = vrsqrt.f32 %v296_v37  ;;  %vm304_vm9 = vweird.f32 %v296_v37 }
 0x148   : > { %v295_v38 = vpop.xlane.xlu0 %294 }
 0x149   : > { %v554_v39 = vpop.eup %553  ;;  %v297_v40 = vmax.f32 %v295_v38, 1e-24 }
 0x14a   : > { %v299_v41 = vmul.f32 %v554_v39, %v296_v37  ;;  %vm305_vm8 = vweird.f32 %v554_v39 }
 0x14b   : > { %555 = vrsqrt.f32 %v297_v40  ;;  %vm306_vm10 = vmor %vm304_vm9, %vm305_vm8  ;;  %vm314_vm12 = vweird.f32 %v297_v40 }
 0x14c   : > { %v300_v42 = vmul.f32 %v554_v39, %v299_v41 }
 0x14e   : > { %v301_v43 = vmul.f32 0.5, %v300_v42 }
 0x150   : > { %v302_v44 = vsub.f32 1.5, %v301_v43 }
 0x151   : > { %v556_v45 = vpop.eup %555 }
 0x152   : > { %v303_v46 = vmul.f32 %v554_v39, %v302_v44  ;;  %v309_v47 = vmul.f32 %v556_v45, %v297_v40  ;;  %vm315_vm11 = vweird.f32 %v556_v45 }
 0x153   : > { %vm316_vm13 = vmor %vm314_vm12, %vm315_vm11 }
 0x154   : > { %v307_v48 = vsel %vm306_vm10, %v554_v39, %v303_v46  ;;  %v310_v49 = vmul.f32 %v556_v45, %v309_v47 }
 0x155   : > { %v318_v50 = vmul.f32 1.4142135, %v307_v48 }
 0x156   : > { %v311_v51 = vmul.f32 0.5, %v310_v49 }
 0x157   : > { %v320_v52 = vmul.f32 %v318_v50, %v285_v29 }
 0x158   : > { %v312_v53 = vsub.f32 1.5, %v311_v51 }
 0x159   : > { %324 = vst.msk [vmem:[%s799_s16] sm:$0xff] %vm289_vm7, %v320_v52 }
 0x15a   : > { %v313_v54 = vmul.f32 %v556_v45, %v312_v53 }
 0x15c   : > { %v317_v55 = vsel %vm316_vm13, %v556_v45, %v313_v54 }
 0x15d   : > { %v319_v56 = vmul.f32 1.4142135, %v317_v55 }
 0x15f   : > { %v321_v57 = vmul.f32 %v319_v56, %v286_v32 }
 0x161   : > { %325 = vst.msk [vmem:[%s799_s16 + $0x8] sm:$0xff] %vm289_vm7, %v321_v57 }
 0x162 PF: > { %s465_s15 = sshll.u32 %s695_s12, 4  ;;  %s340_s24 = sshll.u32 %s799_s16, 4  ;;  %s341_s24 = int_to_ptr.vmem [resolvable:$true] %s340_s24 }
 0x163   : > { %s339_s23 = scalar_lea.hbm %s861_s2, %s465_s15  ;;  %s327_s26 = scalar_lea.sflag [#allocation4], %s226_s7 }
 0x164   : > { %s342_s25 = sshll.u32 %s339_s23, 4  ;;  %s637_s12 = scalar_lea.hbm %s861_s2, 32  ;;  %s343_s25 = int_to_ptr.hbm [resolvable:$true] %s342_s25 }
 0x165   : > { %s631_s27 = sshra.s32 %s343_s25, 4  ;;  %s632_s27 = int_to_ptr.hbm [resolvable:$true] %s631_s27 }
 0x166   : > { %s633_s28 = scalar_lea.hbm %s632_s27, 16  ;;  %p638_p10 = scmp.lt.s32.totalorder %s632_s27, %s861_s2 }
 0x167   : > { %p634_p5 = scmp.ne.s32.totalorder %s632_s27, %s633_s28  ;;  %p639_p11 = scmp.lt.s32.totalorder %s637_s12, %s633_s28 }
 0x169   : > { %p635_p7 = pnand %p634_p5, %p770_p4  ;;  %p640_p12 = por %p639_p11, %p638_p10 }
 0x16b   : > { %p636_p9 = pneg %p635_p7 }
 0x16d   : > { %p641_p13 = pnand %p640_p12, %p636_p9 }
 0x16f   : > { %644 = shalt.err (!%p641_p13)
}
 0x170   : > { %s711_s5 = smov 128   ;;  %s712_s6 = smov 8  }
 0x171   : > { %474 = dma.vmem_to_hbm [thread:$0]  (%p770_p4), %s341_s24, 256, %s343_s25, %s327_s26, %s711_s5, %s711_s5, %s712_s6  }
 0x172 PF: > { %s357_s7 = sand.u32 1, %s683_s9   ;;  %p484_p0 = pnand %p451_p6, %p777_p8 }
 0x173   : > { %s358_s8 = scalar_lea.sflag [#allocation4], %s357_s7 }
 0x174   : > { %p485_p1 = pneg %p484_p0 }
 0x176   : > { %678 = dma.done.wait (%p485_p1), %s358_s8, 256  }
 0x177   : > { %680 = vsyncadd (%p485_p1), %s358_s8, 4294967040  ;;  %s21_s14 = sadd.s32 1, %s703_s14   ;;  %s864_s9 = smov %s687_s10 }
 0x178   : > { %p18_p2 = scmp.ge.s32.totalorder %s21_s14, 4   ;;  %s865_s10 = smov %s691_s11 }
 0x179   : > { %s866_s11 = smov %s783_s22  ;;  %s867_s12 = smov %s699_s13 }
 0x17a   : > { %s868_s13 = smov %s870_s17  ;;  %20 = sbr.rel (!%p18_p2) target bundleno = 8 (0x8), region = 94 }
 0x17f   :  { %364 = vsyncpa [#allocation3], 1 }
 0x180   :  { %366 = vsyncpa [#allocation3 + $0x1], 1 }
 0x181   :  { %367 = vsyncpa [#allocation6], 1 }
 0x182   :  { %369 = vsyncpa [#allocation6 + $0x1], 1 }
 0x183   :  { %370 = vsyncpa [#allocation4], 1 }
 0x184   :  { %372 = vsyncpa [#allocation4 + $0x1], 1 }

</bundles_post_ra>
